<compile_context>
chip_gen: v7x
topology: tpu7x:2x2x1
jax: 0.10.0
libtpu: 0.0.40
codegen_flags: <defaults>
</compile_context>

<pallas_src>
import jax
import jax.numpy as jnp
from jax.experimental import pallas as pl
from jax.experimental.pallas import tpu as pltpu

_LANES = 128
_MAX_BLOCK_ROWS = 2048   # 2048 x 128 f32 = 1 MiB per block
_ROW_ALIGN = 16          # multiple of 8 (f32) and 16 (bf16/fp16) sublane tiling


def _cdiv(a, b):
    return -(-a // b)


def _round_up(a, m):
    return _cdiv(a, m) * m


def _plan_slab(n):
    """Choose (padded_rows, block_rows) for a flat length-n signal."""
    rows = max(1, _cdiv(n, _LANES))
    nblocks = _cdiv(rows, _MAX_BLOCK_ROWS)
    block_rows = _cdiv(rows, nblocks)
    if nblocks > 1:
        block_rows = _round_up(block_rows, _ROW_ALIGN)  # stays <= _MAX_BLOCK_ROWS
    return block_rows * nblocks, block_rows


def _to_slab(flat, padded_rows):
    n = flat.shape[0]
    padded_n = padded_rows * _LANES
    if padded_n != n:
        # Zero padding: exact for the sum / sum-of-squares reduction; the
        # corresponding output tail is sliced off afterwards. Only triggers
        # for lengths that don't already fit the slab.
        flat = jnp.pad(flat, (0, padded_n - n))
    return flat.reshape(padded_rows, _LANES)


# ---------------------------------------------------------------------------
# Pass 1: fused reduction — per-lane sum and sum-of-squares for fg and bg.
# ---------------------------------------------------------------------------
def _stats_kernel(fg_ref, bg_ref, sfg_ref, sfg2_ref, sbg_ref, sbg2_ref):
    @pl.when(pl.program_id(0) == 0)
    def _():
        sfg_ref[...] = jnp.zeros_like(sfg_ref)
        sfg2_ref[...] = jnp.zeros_like(sfg2_ref)
        sbg_ref[...] = jnp.zeros_like(sbg_ref)
        sbg2_ref[...] = jnp.zeros_like(sbg2_ref)

    fg = fg_ref[...].astype(jnp.float32)
    bg = bg_ref[...].astype(jnp.float32)
    # Reduce over the sublane (row) axis only; keep the 128 lanes.
    sfg_ref[...] += jnp.sum(fg, axis=0, keepdims=True)
    sfg2_ref[...] += jnp.sum(fg * fg, axis=0, keepdims=True)
    sbg_ref[...] += jnp.sum(bg, axis=0, keepdims=True)
    sbg2_ref[...] += jnp.sum(bg * bg, axis=0, keepdims=True)


def _stats_call(fg2d, bg2d, block_rows):
    rows, lanes = fg2d.shape
    grid = (rows // block_rows,)
    stat_shape = jax.ShapeDtypeStruct((1, lanes), jnp.float32)
    stat_spec = pl.BlockSpec((1, lanes), lambda i: (0, 0))
    big_spec = pl.BlockSpec((block_rows, lanes), lambda i: (i, 0))
    return pl.pallas_call(
        _stats_kernel,
        out_shape=(stat_shape, stat_shape, stat_shape, stat_shape),
        grid_spec=pltpu.PrefetchScalarGridSpec(
            num_scalar_prefetch=0,
            grid=grid,
            in_specs=[big_spec, big_spec],
            out_specs=(stat_spec, stat_spec, stat_spec, stat_spec),
        ),
        compiler_params=pltpu.CompilerParams(
            dimension_semantics=("arbitrary",)),   # accumulator outputs
    )(fg2d, bg2d)


# ---------------------------------------------------------------------------
# Pass 2: fused demean + scale + add:  out = (fg - mean_fg) + scale*(bg - mean_bg)
# ---------------------------------------------------------------------------
def _combine_kernel(params_ref, fg_ref, bg_ref, out_ref):
    mean_fg = params_ref[0]
    mean_bg = params_ref[1]
    scale = params_ref[2]
    fg = fg_ref[...].astype(jnp.float32)
    bg = bg_ref[...].astype(jnp.float32)
    out = (fg - mean_fg) + scale * (bg - mean_bg)
    out_ref[...] = out.astype(out_ref.dtype)


def _combine_call(params, fg2d, bg2d, block_rows, out_dtype):
    rows, lanes = fg2d.shape
    grid = (rows // block_rows,)
    big_spec = pl.BlockSpec((block_rows, lanes), lambda i: (i, 0))
    return pl.pallas_call(
        _combine_kernel,
        out_shape=jax.ShapeDtypeStruct((rows, lanes), out_dtype),
        grid_spec=pltpu.PrefetchScalarGridSpec(
            num_scalar_prefetch=0,
            grid=grid,
            in_specs=[
                pl.BlockSpec(memory_space=pltpu.MemorySpace.SMEM),  # f32[3] scalars
                big_spec,
                big_spec,
            ],
            out_specs=pl.BlockSpec((block_rows, lanes), lambda i: (i, 0)),
        ),
        compiler_params=pltpu.CompilerParams(
            dimension_semantics=("parallel",)),    # megacore-shardable on v7x
    )(params, fg2d, bg2d)


# ---------------------------------------------------------------------------
# Wrapper — JAX/Pallas equivalent of CombineWithRandomDBSNR.forward.
# ---------------------------------------------------------------------------
def combine_with_random_db_snr(foreground_wav, background_wav, key,
                               low_snr=-10.0, high_snr=10.0):
    if foreground_wav is None and background_wav is None:
        raise ValueError("At least one of foreground_wav / background_wav must be given.")

    # rand_db_snr = low + (high - low) * rand();  rms_ratio = 10 ** (snr / 20)
    rand_db_snr = low_snr + (high_snr - low_snr) * jax.random.uniform(
        key, (), dtype=jnp.float32)
    rms_ratio = jnp.power(jnp.float32(10.0), rand_db_snr / jnp.float32(20.0))

    # None handling mirrors the PyTorch module (missing signal -> zeros).
    if foreground_wav is None:
        foreground_wav = jnp.zeros_like(background_wav)
    if background_wav is None:
        background_wav = jnp.zeros_like(foreground_wav)
    assert foreground_wav.shape == background_wav.shape, "fg/bg shapes must match"

    orig_shape = foreground_wav.shape
    out_dtype = jnp.result_type(foreground_wav.dtype, background_wav.dtype)
    n = int(foreground_wav.size)

    padded_rows, block_rows = _plan_slab(n)
    fg2d = _to_slab(foreground_wav.reshape(-1), padded_rows)
    bg2d = _to_slab(background_wav.reshape(-1), padded_rows)

    # Pass 1 (Pallas): per-lane partial sums; finish the tiny lane reduction in jnp.
    sfg, sfg2, sbg, sbg2 = _stats_call(fg2d, bg2d, block_rows)
    inv_n = jnp.float32(1.0 / n)
    mean_fg = jnp.sum(sfg) * inv_n
    mean_bg = jnp.sum(sbg) * inv_n
    # RMS of the demeaned signal: sqrt(E[x^2] - mean^2), clamped at 0.
    rms_fg = jnp.sqrt(jnp.maximum(jnp.sum(sfg2) * inv_n - mean_fg * mean_fg, 0.0))
    rms_bg = jnp.sqrt(jnp.maximum(jnp.sum(sbg2) * inv_n - mean_bg * mean_bg, 0.0))
    # noise_scale_factor branch logic from the PyTorch module.
    scale = jnp.where(rms_fg == 0.0, jnp.float32(1.0),
                      jnp.where(rms_bg == 0.0, jnp.float32(0.0),
                                rms_fg / (rms_bg * rms_ratio)))
    params = jnp.stack([mean_fg, mean_bg, scale]).astype(jnp.float32)

    # Pass 2 (Pallas): fused demean + scale + add.
    out2d = _combine_call(params, fg2d, bg2d, block_rows, out_dtype)
    out_flat = out2d.reshape(-1)
    if out_flat.shape[0] != n:        # only when the padding fallback triggered
        out_flat = out_flat[:n]
    return out_flat.reshape(orig_shape), None


if __name__ == "__main__":
    key = jax.random.PRNGKey(0)
    k_fg, k_bg, k_snr = jax.random.split(key, 3)

    # ~1 s of 16 kHz audio; length is a multiple of 128 -> copy-free fast path.
    n = 16384
    fg = jax.random.normal(k_fg, (n,), dtype=jnp.float32) * 0.1 + 0.05
    bg = jax.random.normal(k_bg, (n,), dtype=jnp.float32) * 0.3 - 0.02

    out, none_out = combine_with_random_db_snr(fg, bg, k_snr)
    jax.block_until_ready(out)
    assert none_out is None

    # Plain-JAX reference mirroring the PyTorch forward.
    def reference(fg, bg, key, low_snr=-10.0, high_snr=10.0):
        rand_db_snr = low_snr + (high_snr - low_snr) * jax.random.uniform(
            key, (), dtype=jnp.float32)
        rms_ratio = 10.0 ** (rand_db_snr / 20.0)
        fg_d = fg - jnp.mean(fg)
        bg_d = bg - jnp.mean(bg)
        rms_fg = jnp.sqrt(jnp.mean(fg_d ** 2))
        rms_bg = jnp.sqrt(jnp.mean(bg_d ** 2))
        scale = jnp.where(rms_fg == 0, 1.0,
                          jnp.where(rms_bg == 0, 0.0, rms_fg / (rms_bg * rms_ratio)))
        return fg_d + scale * bg_d

    ref = reference(fg, bg, k_snr)
    assert jnp.allclose(out, ref, atol=1e-5, rtol=1e-4), float(jnp.max(jnp.abs(out - ref)))

    # Odd length -> exercises the pad + slice fallback path.
    n2 = 3001
    fg2 = jax.random.normal(jax.random.PRNGKey(1), (n2,), dtype=jnp.float32)
    bg2 = jax.random.normal(jax.random.PRNGKey(2), (n2,), dtype=jnp.float32)
    out2, _ = combine_with_random_db_snr(fg2, bg2, k_snr)
    jax.block_until_ready(out2)
    ref2 = reference(fg2, bg2, k_snr)
    assert jnp.allclose(out2, ref2, atol=1e-5, rtol=1e-4)

    # None-background path: rms_bg == 0 -> scale 0 -> just the demeaned foreground.
    out3, none3 = combine_with_random_db_snr(fg, None, k_snr)
    jax.block_until_ready(out3)
    assert none3 is None
    ref3 = fg - jnp.mean(fg)
    assert jnp.allclose(out3, ref3, atol=1e-5, rtol=1e-4)

    print("KERNEL_OK")
</pallas_src>

<mosaic_0001>
module attributes {stable_mosaic.version = 11 : i64} {
  func.func @_stats_kernel(%arg0: i32, %arg1: memref<128x128xf32, #tpu.memory_space<vmem>>, %arg2: memref<128x128xf32, #tpu.memory_space<vmem>>, %arg3: memref<1x128xf32, #tpu.memory_space<vmem>>, %arg4: memref<1x128xf32, #tpu.memory_space<vmem>>, %arg5: memref<1x128xf32, #tpu.memory_space<vmem>>, %arg6: memref<1x128xf32, #tpu.memory_space<vmem>>) attributes {dimension_semantics = [#tpu.dimension_semantics<arbitrary>], iteration_bounds = array<i64: 1>, scalar_prefetch = 0 : i64, scratch_operands = 0 : i64, tpu.core_type = #tpu.core_type<tc>, window_params = [{transform_indices = @transform_0, window_bounds = array<i64: 128, 128>}, {transform_indices = @transform_1, window_bounds = array<i64: 128, 128>}, {pipeline_mode = #tpu.pipeline_mode<synchronous>, transform_indices = @transform_2, window_bounds = array<i64: 1, 128>}, {pipeline_mode = #tpu.pipeline_mode<synchronous>, transform_indices = @transform_3, window_bounds = array<i64: 1, 128>}, {pipeline_mode = #tpu.pipeline_mode<synchronous>, transform_indices = @transform_4, window_bounds = array<i64: 1, 128>}, {pipeline_mode = #tpu.pipeline_mode<synchronous>, transform_indices = @transform_5, window_bounds = array<i64: 1, 128>}]} {
    %c0_i32 = arith.constant 0 : i32
    %0 = arith.cmpi eq, %arg0, %c0_i32 : i32
    %1 = arith.extui %0 : i1 to i32
    %c0_i32_0 = arith.constant 0 : i32
    %2 = arith.cmpi ne, %1, %c0_i32_0 : i32
    scf.if %2 {
      %cst_23 = arith.constant 0.000000e+00 : f32
      %27 = vector.broadcast %cst_23 : f32 to vector<1x128xf32>
      %c0_24 = arith.constant 0 : index
      %c0_25 = arith.constant 0 : index
      %28 = vector.load %arg3[%c0_24, %c0_25] : memref<1x128xf32, #tpu.memory_space<vmem>>, vector<1x128xf32>
      tpu.vector_store %arg3[%c0_24, %c0_25], %27 {strides = array<i32>} : memref<1x128xf32, #tpu.memory_space<vmem>>, vector<1x128xf32>,
      %cst_26 = arith.constant 0.000000e+00 : f32
      %29 = vector.broadcast %cst_26 : f32 to vector<1x128xf32>
      %c0_27 = arith.constant 0 : index
      %c0_28 = arith.constant 0 : index
      %30 = vector.load %arg4[%c0_27, %c0_28] : memref<1x128xf32, #tpu.memory_space<vmem>>, vector<1x128xf32>
      tpu.vector_store %arg4[%c0_27, %c0_28], %29 {strides = array<i32>} : memref<1x128xf32, #tpu.memory_space<vmem>>, vector<1x128xf32>,
      %cst_29 = arith.constant 0.000000e+00 : f32
      %31 = vector.broadcast %cst_29 : f32 to vector<1x128xf32>
      %c0_30 = arith.constant 0 : index
      %c0_31 = arith.constant 0 : index
      %32 = vector.load %arg5[%c0_30, %c0_31] : memref<1x128xf32, #tpu.memory_space<vmem>>, vector<1x128xf32>
      tpu.vector_store %arg5[%c0_30, %c0_31], %31 {strides = array<i32>} : memref<1x128xf32, #tpu.memory_space<vmem>>, vector<1x128xf32>,
      %cst_32 = arith.constant 0.000000e+00 : f32
      %33 = vector.broadcast %cst_32 : f32 to vector<1x128xf32>
      %c0_33 = arith.constant 0 : index
      %c0_34 = arith.constant 0 : index
      %34 = vector.load %arg6[%c0_33, %c0_34] : memref<1x128xf32, #tpu.memory_space<vmem>>, vector<1x128xf32>
      tpu.vector_store %arg6[%c0_33, %c0_34], %33 {strides = array<i32>} : memref<1x128xf32, #tpu.memory_space<vmem>>, vector<1x128xf32>,
    } else {
    }
    %c0 = arith.constant 0 : index
    %c0_1 = arith.constant 0 : index
    %3 = vector.load %arg1[%c0, %c0_1] : memref<128x128xf32, #tpu.memory_space<vmem>>, vector<128x128xf32>
    %c0_2 = arith.constant 0 : index
    %c0_3 = arith.constant 0 : index
    %4 = vector.load %arg2[%c0_2, %c0_3] : memref<128x128xf32, #tpu.memory_space<vmem>>, vector<128x128xf32>
    %c0_4 = arith.constant 0 : index
    %c0_5 = arith.constant 0 : index
    %5 = vector.load %arg3[%c0_4, %c0_5] : memref<1x128xf32, #tpu.memory_space<vmem>>, vector<1x128xf32>
    %cst = arith.constant dense<0.000000e+00> : vector<128xf32>
    %6 = vector.multi_reduction <add>, %3, %cst [0] : vector<128x128xf32> to vector<128xf32>
    %7 = vector.shape_cast %6 : vector<128xf32> to vector<1x128xf32>
    %8 = arith.addf %5, %7 : vector<1x128xf32>
    %c0_6 = arith.constant 0 : index
    %c0_7 = arith.constant 0 : index
    %9 = vector.load %arg3[%c0_6, %c0_7] : memref<1x128xf32, #tpu.memory_space<vmem>>, vector<1x128xf32>
    tpu.vector_store %arg3[%c0_6, %c0_7], %8 {strides = array<i32>} : memref<1x128xf32, #tpu.memory_space<vmem>>, vector<1x128xf32>,
    %c0_8 = arith.constant 0 : index
    %c0_9 = arith.constant 0 : index
    %10 = vector.load %arg4[%c0_8, %c0_9] : memref<1x128xf32, #tpu.memory_space<vmem>>, vector<1x128xf32>
    %11 = arith.mulf %3, %3 : vector<128x128xf32>
    %cst_10 = arith.constant dense<0.000000e+00> : vector<128xf32>
    %12 = vector.multi_reduction <add>, %11, %cst_10 [0] : vector<128x128xf32> to vector<128xf32>
    %13 = vector.shape_cast %12 : vector<128xf32> to vector<1x128xf32>
    %14 = arith.addf %10, %13 : vector<1x128xf32>
    %c0_11 = arith.constant 0 : index
    %c0_12 = arith.constant 0 : index
    %15 = vector.load %arg4[%c0_11, %c0_12] : memref<1x128xf32, #tpu.memory_space<vmem>>, vector<1x128xf32>
    tpu.vector_store %arg4[%c0_11, %c0_12], %14 {strides = array<i32>} : memref<1x128xf32, #tpu.memory_space<vmem>>, vector<1x128xf32>,
    %c0_13 = arith.constant 0 : index
    %c0_14 = arith.constant 0 : index
    %16 = vector.load %arg5[%c0_13, %c0_14] : memref<1x128xf32, #tpu.memory_space<vmem>>, vector<1x128xf32>
    %cst_15 = arith.constant dense<0.000000e+00> : vector<128xf32>
    %17 = vector.multi_reduction <add>, %4, %cst_15 [0] : vector<128x128xf32> to vector<128xf32>
    %18 = vector.shape_cast %17 : vector<128xf32> to vector<1x128xf32>
    %19 = arith.addf %16, %18 : vector<1x128xf32>
    %c0_16 = arith.constant 0 : index
    %c0_17 = arith.constant 0 : index
    %20 = vector.load %arg5[%c0_16, %c0_17] : memref<1x128xf32, #tpu.memory_space<vmem>>, vector<1x128xf32>
    tpu.vector_store %arg5[%c0_16, %c0_17], %19 {strides = array<i32>} : memref<1x128xf32, #tpu.memory_space<vmem>>, vector<1x128xf32>,
    %c0_18 = arith.constant 0 : index
    %c0_19 = arith.constant 0 : index
    %21 = vector.load %arg6[%c0_18, %c0_19] : memref<1x128xf32, #tpu.memory_space<vmem>>, vector<1x128xf32>
    %22 = arith.mulf %4, %4 : vector<128x128xf32>
    %cst_20 = arith.constant dense<0.000000e+00> : vector<128xf32>
    %23 = vector.multi_reduction <add>, %22, %cst_20 [0] : vector<128x128xf32> to vector<128xf32>
    %24 = vector.shape_cast %23 : vector<128xf32> to vector<1x128xf32>
    %25 = arith.addf %21, %24 : vector<1x128xf32>
    %c0_21 = arith.constant 0 : index
    %c0_22 = arith.constant 0 : index
    %26 = vector.load %arg6[%c0_21, %c0_22] : memref<1x128xf32, #tpu.memory_space<vmem>>, vector<1x128xf32>
    tpu.vector_store %arg6[%c0_21, %c0_22], %25 {strides = array<i32>} : memref<1x128xf32, #tpu.memory_space<vmem>>, vector<1x128xf32>,
    return
  }
  func.func @transform_0(%arg0: i32) -> (i32, i32) {
    %c0_i32 = arith.constant 0 : i32
    %c0_i32_0 = arith.constant 0 : i32
    return %arg0, %c0_i32 : i32, i32
  }
  func.func @transform_1(%arg0: i32) -> (i32, i32) {
    %c0_i32 = arith.constant 0 : i32
    %c0_i32_0 = arith.constant 0 : i32
    return %arg0, %c0_i32 : i32, i32
  }
  func.func @transform_2(%arg0: i32) -> (i32, i32) {
    %c0_i32 = arith.constant 0 : i32
    %c0_i32_0 = arith.constant 0 : i32
    %c0_i32_1 = arith.constant 0 : i32
    return %c0_i32, %c0_i32_0 : i32, i32
  }
  func.func @transform_3(%arg0: i32) -> (i32, i32) {
    %c0_i32 = arith.constant 0 : i32
    %c0_i32_0 = arith.constant 0 : i32
    %c0_i32_1 = arith.constant 0 : i32
    return %c0_i32, %c0_i32_0 : i32, i32
  }
  func.func @transform_4(%arg0: i32) -> (i32, i32) {
    %c0_i32 = arith.constant 0 : i32
    %c0_i32_0 = arith.constant 0 : i32
    %c0_i32_1 = arith.constant 0 : i32
    return %c0_i32, %c0_i32_0 : i32, i32
  }
  func.func @transform_5(%arg0: i32) -> (i32, i32) {
    %c0_i32 = arith.constant 0 : i32
    %c0_i32_0 = arith.constant 0 : i32
    %c0_i32_1 = arith.constant 0 : i32
    return %c0_i32, %c0_i32_0 : i32, i32
  }
}

</mosaic_0001>

<bundles_post_ra>
// kernel: tpu_custom_call.1
= control target key start
LH: loop header
LB: loop body
LE: loop exit
PB: predicated region body
PF: predicated region fallthrough
CT: control target
= control target key end

     0   :  { %11 = vsyncpa [#allocation3], 0  ;;  %s544_s0 = inlined_call_operand.hbm [shape: f32[128,128], index: 0, kind: input, shape index: {}]   ;;  %s545_s1 = inlined_call_operand.hbm [shape: f32[128,128], index: 1, kind: input, shape index: {}]   ;;  %s546_s2 = inlined_call_operand.hbm [shape: f32[1,128], index: 2, kind: output, shape index: {0}]   ;;  %s547_s3 = inlined_call_operand.hbm [shape: f32[1,128], index: 3, kind: output, shape index: {1}]   ;;  %s548_s4 = inlined_call_operand.hbm [shape: f32[1,128], index: 4, kind: output, shape index: {2}]   ;;  %s549_s5 = inlined_call_operand.hbm [shape: f32[1,128], index: 5, kind: output, shape index: {3}]  }
   0x1   :  { %12 = vsyncpa [#allocation6], 0 }
   0x2   :  { %13 = vsyncpa [#allocation4], 0 }
   0x3   :  { %14 = vsyncpa [#allocation9], 0 }
   0x4   :  { %15 = vsyncpa [#allocation12], 0  ;;  %s422_s18 = smov [#allocation2]   ;;  %s280_s22 = scalar_lea.hbm %s544_s0, 2048 }
   0x5   :  { %s21_s19 = sshll.u32 %s422_s18, 4  ;;  %p281_p0 = scmp.ne.s32.totalorder %s544_s0, %s280_s22  ;;  %s22_s19 = int_to_ptr.vmem [resolvable:$true] %s21_s19 }
   0x6   :  { %p284_p1 = scmp.lt.u32.totalorder %s280_s22, %s544_s0 }
   0x8   :  { %p286_p2 = pnand %p284_p1, %p281_p0 }
   0xa   :  { %289 = shalt.err (!%p286_p2)
}
   0xb   :  { %s290_s27 = scalar_lea.vmem %s22_s19, 2048  ;;  %p295_p4 = scmp.lt.s32.totalorder %s22_s19, %s22_s19 }
   0xc   :  { %p291_p3 = scmp.ne.s32.totalorder %s22_s19, %s290_s27  ;;  %p296_p5 = scmp.lt.s32.totalorder %s290_s27, %s290_s27 }
   0xe   :  { %p297_p6 = por %p296_p5, %p295_p4 }
  0x10   :  { %p298_p7 = pnand %p297_p6, %p291_p3 }
  0x12   :  { %301 = shalt.err (!%p298_p7)
}
  0x13   :  { %s423_s28 = smov 128   ;;  %s424_s29 = smov 8  }
  0x14   :  { %27 = dma.hbm_to_vmem [thread:$0]  %s544_s0, 2048, %s22_s19, [#allocation3], %s423_s28, %s423_s28, %s424_s29  }
  0x15   :  { %s425_s7 = smov [#allocation5]   ;;  %s302_s11 = scalar_lea.hbm %s545_s1, 2048 }
  0x16   :  { %s33_s8 = sshll.u32 %s425_s7, 4  ;;  %p303_p8 = scmp.ne.s32.totalorder %s545_s1, %s302_s11  ;;  %s34_s8 = int_to_ptr.vmem [resolvable:$true] %s33_s8 }
  0x17   :  { %p306_p9 = scmp.lt.u32.totalorder %s302_s11, %s545_s1 }
  0x19   :  { %p308_p10 = pnand %p306_p9, %p303_p8 }
  0x1b   :  { %311 = shalt.err (!%p308_p10)
}
  0x1c   :  { %s312_s16 = scalar_lea.vmem %s34_s8, 2048  ;;  %p317_p12 = scmp.lt.s32.totalorder %s34_s8, %s34_s8 }
  0x1d   :  { %p313_p11 = scmp.ne.s32.totalorder %s34_s8, %s312_s16  ;;  %p318_p13 = scmp.lt.s32.totalorder %s312_s16, %s312_s16 }
  0x1f   :  { %p319_p0 = por %p318_p13, %p317_p12 }
  0x21   :  { %p320_p1 = pnand %p319_p0, %p313_p11 }
  0x23   :  { %323 = shalt.err (!%p320_p1)
}
  0x24   :  { %39 = dma.hbm_to_vmem [thread:$0]  %s545_s1, 2048, %s34_s8, [#allocation6], %s423_s28, %s423_s28, %s424_s29  }
  0x25   :  { %412 = dma.done.wait [#allocation3], 2048  }
  0x26   :  { %413 = vsyncadd [#allocation3], 4294965248 }
  0x27   :  { %414 = dma.done.wait [#allocation6], 2048  }
  0x28   :  { %415 = vsyncadd [#allocation6], 4294965248  ;;  %v426_v0 = vmov 0.0   ;;  %v54_v1 = vld [vmem:[#allocation2] sm:$0xff]  ;;  %v55_v2 = vld [vmem:[#allocation2 + $0x8] sm:$0xff]  ;;  %s427_s1 = smov [#allocation7]  }
  0x29   :  { %51 = vst [vmem:[#allocation8] sm:$0x1] %v426_v0  ;;  %50 = vst [vmem:[#allocation7] sm:$0x1] %v426_v0  ;;  %v56_v3 = vld [vmem:[#allocation2 + $0x10] sm:$0xff]  ;;  %v57_v4 = vld [vmem:[#allocation2 + $0x18] sm:$0xff]  ;;  %v111_v5 = vmul.f32 %v54_v1, %v54_v1  ;;  %v112_v6 = vmul.f32 %v55_v2, %v55_v2  ;;  %v87_v8 = vadd.f32 %v55_v2, %v54_v1 }
  0x2a   :  { %52 = vst [vmem:[#allocation10] sm:$0x1] %v426_v0  ;;  %53 = vst [vmem:[#allocation11] sm:$0x1] %v426_v0  ;;  %v113_v7 = vmul.f32 %v56_v3, %v56_v3  ;;  %v58_v9 = vld [vmem:[#allocation2 + $0x20] sm:$0xff]  ;;  %v114_v10 = vmul.f32 %v57_v4, %v57_v4  ;;  %v59_v12 = vld [vmem:[#allocation2 + $0x28] sm:$0xff] }
  0x2b   :  { %v127_v11 = vadd.f32 %v112_v6, %v111_v5  ;;  %v88_v13 = vadd.f32 %v87_v8, %v56_v3  ;;  %v60_v14 = vld [vmem:[#allocation2 + $0x30] sm:$0xff]  ;;  %v115_v15 = vmul.f32 %v58_v9, %v58_v9  ;;  %v70_v18 = vld [vmem:[#allocation5] sm:$0xff]  ;;  %v71_v19 = vld [vmem:[#allocation5 + $0x8] sm:$0xff]  ;;  %v116_v20 = vmul.f32 %v59_v12, %v59_v12  ;;  %s220_s18 = sshll.u32 %s427_s1, 4  ;;  %s428_s19 = smov [#allocation8]   ;;  %s221_s18 = int_to_ptr.vmem [resolvable:$true] %s220_s18 }
  0x2c   :  { %v151_v22 = vadd.f32 %v71_v19, %v70_v18  ;;  %v61_v23 = vld [vmem:[#allocation2 + $0x38] sm:$0xff]  ;;  %v117_v24 = vmul.f32 %v60_v14, %v60_v14  ;;  %v72_v26 = vld [vmem:[#allocation5 + $0x10] sm:$0xff]  ;;  %v62_v27 = vld [vmem:[#allocation2 + $0x40] sm:$0xff]  ;;  %v175_v30 = vmul.f32 %v70_v18, %v70_v18  ;;  %v176_v31 = vmul.f32 %v71_v19, %v71_v19  ;;  %s230_s20 = sshll.u32 %s428_s19, 4  ;;  %s429_s21 = smov [#allocation10]   ;;  %s485_s20 = int_to_ptr.vmem [resolvable:$true] %s230_s20 }
  0x2d   :  { %v128_v16 = vadd.f32 %v127_v11, %v113_v7  ;;  %v89_v17 = vadd.f32 %v88_v13, %v57_v4  ;;  %v73_v33 = vld [vmem:[#allocation5 + $0x18] sm:$0xff]  ;;  %v63_v34 = vld [vmem:[#allocation2 + $0x48] sm:$0xff]  ;;  %v118_v35 = vmul.f32 %v61_v23, %v61_v23  ;;  %v177_v38 = vmul.f32 %v72_v26, %v72_v26  ;;  %v74_v41 = vld [vmem:[#allocation5 + $0x20] sm:$0xff]  ;;  %s487_s22 = sshll.u32 %s429_s21, 4  ;;  %s324_s23 = scalar_lea.vmem %s221_s18, 16  ;;  %s241_s22 = int_to_ptr.vmem [resolvable:$true] %s487_s22 }
  0x2e   :  { %v152_v29 = vadd.f32 %v151_v22, %v72_v26  ;;  %v119_v39 = vmul.f32 %v62_v27, %v62_v27  ;;  %v64_v42 = vld [vmem:[#allocation2 + $0x50] sm:$0xff]  ;;  %v178_v45 = vmul.f32 %v73_v33, %v73_v33  ;;  %v191_v46 = vadd.f32 %v176_v31, %v175_v30  ;;  %v75_v49 = vld [vmem:[#allocation5 + $0x28] sm:$0xff]  ;;  %v65_v50 = vld [vmem:[#allocation2 + $0x58] sm:$0xff]  ;;  %p325_p2 = scmp.ne.s32.totalorder %s221_s18, %s324_s23  ;;  %s328_s24 = scalar_lea.vmem %s221_s18, 32 }
  0x2f   :  { %v129_v21 = vadd.f32 %v128_v16, %v114_v10  ;;  %v90_v25 = vadd.f32 %v89_v17, %v58_v9  ;;  %v120_v47 = vmul.f32 %v63_v34, %v63_v34  ;;  %v179_v53 = vmul.f32 %v74_v41, %v74_v41  ;;  %v76_v57 = vld [vmem:[#allocation5 + $0x30] sm:$0xff]  ;;  %v66_v58 = vld [vmem:[#allocation2 + $0x60] sm:$0xff]  ;;  %v77_v1 = vld [vmem:[#allocation5 + $0x38] sm:$0xff]  ;;  %p329_p3 = scmp.lt.s32.totalorder %s221_s18, %s221_s18  ;;  %p330_p4 = scmp.lt.s32.totalorder %s328_s24, %s324_s23 }
  0x30   :  { %v153_v37 = vadd.f32 %v152_v29, %v73_v33  ;;  %v192_v54 = vadd.f32 %v191_v46, %v177_v38  ;;  %v121_v55 = vmul.f32 %v64_v42, %v64_v42  ;;  %v180_v61 = vmul.f32 %v75_v49, %v75_v49  ;;  %v67_v2 = vld [vmem:[#allocation2 + $0x68] sm:$0xff]  ;;  %v78_v9 = vld [vmem:[#allocation5 + $0x40] sm:$0xff]  ;;  %v68_v10 = vld [vmem:[#allocation2 + $0x70] sm:$0xff] }
  0x31   :  { %v130_v28 = vadd.f32 %v129_v21, %v115_v15  ;;  %v91_v32 = vadd.f32 %v90_v25, %v59_v12  ;;  %v122_v63 = vmul.f32 %v65_v50, %v65_v50  ;;  %v181_v5 = vmul.f32 %v76_v57, %v76_v57  ;;  %v79_v17 = vld [vmem:[#allocation5 + $0x48] sm:$0xff]  ;;  %v69_v18 = vld [vmem:[#allocation2 + $0x78] sm:$0xff]  ;;  %v80_v25 = vld [vmem:[#allocation5 + $0x50] sm:$0xff]  ;;  %p331_p5 = por %p330_p4, %p329_p3 }
  0x32   :  { %v154_v44 = vadd.f32 %v153_v37, %v74_v41  ;;  %v193_v62 = vadd.f32 %v192_v54, %v178_v45  ;;  %v123_v7 = vmul.f32 %v66_v58, %v66_v58  ;;  %v182_v13 = vmul.f32 %v77_v1, %v77_v1  ;;  %v82_v38 = vld [vmem:[#allocation5 + $0x60] sm:$0xff] }
  0x33   :  { %v131_v36 = vadd.f32 %v130_v28, %v116_v20  ;;  %v92_v40 = vadd.f32 %v91_v32, %v60_v14  ;;  %v124_v15 = vmul.f32 %v67_v2, %v67_v2  ;;  %v183_v21 = vmul.f32 %v78_v9, %v78_v9  ;;  %v81_v32 = vld [vmem:[#allocation5 + $0x58] sm:$0xff]  ;;  %p332_p6 = pnand %p331_p5, %p325_p2 }
  0x34   :  { %v155_v52 = vadd.f32 %v154_v44, %v75_v49  ;;  %v194_v6 = vadd.f32 %v193_v62, %v179_v53  ;;  %v184_v28 = vmul.f32 %v79_v17, %v79_v17  ;;  %v126_v30 = vmul.f32 %v69_v18, %v69_v18  ;;  %v83_v44 = vld [vmem:[#allocation5 + $0x68] sm:$0xff] }
  0x35   :  { %v132_v43 = vadd.f32 %v131_v36, %v117_v24  ;;  %v93_v48 = vadd.f32 %v92_v40, %v61_v23  ;;  %v125_v23 = vmul.f32 %v68_v10, %v68_v10  ;;  %v186_v41 = vmul.f32 %v81_v32, %v81_v32 }
  0x36   :  { %v156_v60 = vadd.f32 %v155_v52, %v76_v57  ;;  %v195_v14 = vadd.f32 %v194_v6, %v180_v61  ;;  %v188_v53 = vmul.f32 %v83_v44, %v83_v44 }
  0x37   :  { %v133_v51 = vadd.f32 %v132_v43, %v118_v35  ;;  %v94_v56 = vadd.f32 %v93_v48, %v62_v27  ;;  %v185_v35 = vmul.f32 %v80_v25, %v80_v25 }
  0x38   :  { %v157_v4 = vadd.f32 %v156_v60, %v77_v1  ;;  %v196_v22 = vadd.f32 %v195_v14, %v181_v5 }
  0x39   :  { %v134_v59 = vadd.f32 %v133_v51, %v119_v39  ;;  %v95_v0 = vadd.f32 %v94_v56, %v63_v34  ;;  %v85_v56 = vld [vmem:[#allocation5 + $0x78] sm:$0xff] }
  0x3a   :  { %v158_v12 = vadd.f32 %v157_v4, %v78_v9  ;;  %v197_v29 = vadd.f32 %v196_v22, %v182_v13 }
  0x3b   :  { %v135_v3 = vadd.f32 %v134_v59, %v120_v47  ;;  %v96_v8 = vadd.f32 %v95_v0, %v64_v42  ;;  %v187_v47 = vmul.f32 %v82_v38, %v82_v38  ;;  %v190_v0 = vmul.f32 %v85_v56, %v85_v56 }
  0x3c   :  { %v159_v20 = vadd.f32 %v158_v12, %v79_v17  ;;  %v198_v36 = vadd.f32 %v197_v29, %v183_v21 }
  0x3d   :  { %v136_v11 = vadd.f32 %v135_v3, %v121_v55  ;;  %v97_v16 = vadd.f32 %v96_v8, %v65_v50  ;;  %v84_v50 = vld [vmem:[#allocation5 + $0x70] sm:$0xff]  ;;  %v86_v8 = vld [vmem:[#allocation7] sm:$0x1] }
  0x3e   :  { %v160_v27 = vadd.f32 %v159_v20, %v80_v25  ;;  %v199_v42 = vadd.f32 %v198_v36, %v184_v28  ;;  %v189_v59 = vmul.f32 %v84_v50, %v84_v50  ;;  %v150_v20 = vld [vmem:[#allocation10] sm:$0x1] }
  0x3f   :  { %v137_v19 = vadd.f32 %v136_v11, %v122_v63  ;;  %v98_v24 = vadd.f32 %v97_v16, %v66_v58  ;;  %v110_v11 = vld [vmem:[#allocation8] sm:$0x1] }
  0x40   :  { %v161_v34 = vadd.f32 %v160_v27, %v81_v32  ;;  %v200_v48 = vadd.f32 %v199_v42, %v185_v35 }
  0x41   :  { %v138_v26 = vadd.f32 %v137_v19, %v123_v7  ;;  %v99_v31 = vadd.f32 %v98_v24, %v67_v2 }
  0x42   :  { %v162_v40 = vadd.f32 %v161_v34, %v82_v38  ;;  %v201_v54 = vadd.f32 %v200_v48, %v186_v41 }
  0x43   :  { %v139_v33 = vadd.f32 %v138_v26, %v124_v15  ;;  %v100_v37 = vadd.f32 %v99_v31, %v68_v10 }
  0x44   :  { %v163_v46 = vadd.f32 %v162_v40, %v83_v44  ;;  %v202_v60 = vadd.f32 %v201_v54, %v187_v47 }
  0x45   :  { %v140_v39 = vadd.f32 %v139_v33, %v125_v23  ;;  %v101_v43 = vadd.f32 %v100_v37, %v69_v18 }
  0x46   :  { %v164_v52 = vadd.f32 %v163_v46, %v84_v50  ;;  %v203_v1 = vadd.f32 %v202_v60, %v188_v53 }
  0x47   :  { %v141_v45 = vadd.f32 %v140_v39, %v126_v30  ;;  %v102_v49 = vrot.slane %v101_v43, 4 }
  0x48   :  { %v165_v58 = vadd.f32 %v164_v52, %v85_v56  ;;  %v204_v5 = vadd.f32 %v203_v1, %v189_v59 }
  0x49   :  { %v142_v51 = vrot.slane %v141_v45, 4  ;;  %v103_v55 = vadd.f32 %v102_v49, %v101_v43 }
  0x4a   :  { %v166_v63 = vrot.slane %v165_v58, 4  ;;  %v205_v10 = vadd.f32 %v204_v5, %v190_v0 }
  0x4b   :  { %v143_v57 = vadd.f32 %v142_v51, %v141_v45  ;;  %v104_v61 = vrot.slane %v103_v55, 2 }
  0x4c   :  { %v167_v4 = vadd.f32 %v166_v63, %v165_v58  ;;  %v206_v15 = vrot.slane %v205_v10, 4 }
  0x4d   :  { %v144_v62 = vrot.slane %v143_v57, 2  ;;  %v105_v2 = vadd.f32 %v104_v61, %v103_v55 }
  0x4e   :  { %v168_v9 = vrot.slane %v167_v4, 2  ;;  %v207_v19 = vadd.f32 %v206_v15, %v205_v10 }
  0x4f   :  { %v145_v3 = vadd.f32 %v144_v62, %v143_v57  ;;  %v106_v6 = vrot.slane %v105_v2, 1 }
  0x50   :  { %v169_v14 = vadd.f32 %v168_v9, %v167_v4  ;;  %v208_v22 = vrot.slane %v207_v19, 2 }
  0x51   :  { %v146_v7 = vrot.slane %v145_v3, 1  ;;  %v107_v12 = vadd.f32 %v106_v6, %v105_v2 }
  0x52   :  { %v170_v18 = vrot.slane %v169_v14, 1 }
  0x53   :  { %v147_v13 = vadd.f32 %v146_v7, %v145_v3  ;;  %v108_v16 = vadd.f32 %v107_v12, %v86_v8 }
  0x54   :  { %v171_v21 = vadd.f32 %v170_v18, %v169_v14 }
  0x55   :  { %v148_v17 = vadd.f32 %v147_v13, %v110_v11  ;;  %109 = vst [vmem:[#allocation7] sm:$0x1] %v108_v16 }
  0x57   :  { %149 = vst [vmem:[#allocation8] sm:$0x1] %v148_v17 }
  0x58   :  { %335 = shalt.err (!%p332_p6)
}
  0x59   :  { %s336_s27 = scalar_lea.hbm %s546_s2, 16 }
  0x5a   :  { %p337_p7 = scmp.ne.s32.totalorder %s546_s2, %s336_s27  ;;  %p340_p8 = scmp.lt.u32.totalorder %s336_s27, %s546_s2 }
  0x5c   :  { %p342_p9 = pnand %p340_p8, %p337_p7 }
  0x5e   :  { %345 = shalt.err (!%p342_p9)
}
  0x5f   :  { %223 = dma.vmem_to_hbm [thread:$0]  %s221_s18, 16, %s546_s2, [#allocation4]  }
  0x60   :  { %s346_s9 = scalar_lea.vmem %s485_s20, 16  ;;  %s350_s10 = scalar_lea.vmem %s485_s20, 32 }
  0x61   :  { %p347_p10 = scmp.ne.s32.totalorder %s485_s20, %s346_s9  ;;  %p351_p11 = scmp.lt.s32.totalorder %s485_s20, %s485_s20 }
  0x62   :  { %p352_p12 = scmp.lt.s32.totalorder %s350_s10, %s346_s9 }
  0x64   :  { %p353_p13 = por %p352_p12, %p351_p11 }
  0x66   :  { %p354_p0 = pnand %p353_p13, %p347_p10 }
  0x68   :  { %357 = shalt.err (!%p354_p0)
}
  0x69   :  { %s358_s13 = scalar_lea.hbm %s547_s3, 16 }
  0x6a   :  { %p359_p1 = scmp.ne.s32.totalorder %s547_s3, %s358_s13  ;;  %p362_p2 = scmp.lt.u32.totalorder %s358_s13, %s547_s3 }
  0x6c   :  { %p364_p3 = pnand %p362_p2, %p359_p1 }
  0x6e   :  { %367 = shalt.err (!%p364_p3)
}
  0x6f   :  { %233 = dma.vmem_to_hbm [thread:$0]  %s485_s20, 16, %s547_s3, [#allocation9]   ;;  %v172_v23 = vadd.f32 %v171_v21, %v150_v20  ;;  %v209_v24 = vadd.f32 %v208_v22, %v207_v19  ;;  %v174_v26 = vld [vmem:[#allocation11] sm:$0x1] }
  0x70   :  { %s430_s1 = smov [#allocation11]   ;;  %s368_s19 = scalar_lea.vmem %s241_s22, 16 }
  0x71   :  { %173 = vst [vmem:[#allocation10] sm:$0x1] %v172_v23  ;;  %v210_v25 = vrot.slane %v209_v24, 1  ;;  %s250_s18 = sshll.u32 %s430_s1, 4  ;;  %p369_p4 = scmp.ne.s32.totalorder %s241_s22, %s368_s19  ;;  %s251_s18 = int_to_ptr.vmem [resolvable:$true] %s250_s18 }
  0x72   :  { %s372_s21 = scalar_lea.vmem %s241_s22, 32  ;;  %p373_p5 = scmp.lt.s32.totalorder %s241_s22, %s241_s22 }
  0x73   :  { %p374_p6 = scmp.lt.s32.totalorder %s372_s21, %s368_s19 }
  0x75   :  { %p375_p7 = por %p374_p6, %p373_p5 }
  0x77   :  { %p376_p8 = pnand %p375_p7, %p369_p4 }
  0x79   :  { %379 = shalt.err (!%p376_p8)
}
  0x7a   :  { %s380_s3 = scalar_lea.hbm %s548_s4, 16 }
  0x7b   :  { %p381_p9 = scmp.ne.s32.totalorder %s548_s4, %s380_s3  ;;  %p384_p10 = scmp.lt.u32.totalorder %s380_s3, %s548_s4 }
  0x7d   :  { %p386_p11 = pnand %p384_p10, %p381_p9 }
  0x7f   :  { %389 = shalt.err (!%p386_p11)
}
  0x80   :  { %243 = dma.vmem_to_hbm [thread:$0]  %s241_s22, 16, %s548_s4, [#allocation9]   ;;  %v211_v27 = vadd.f32 %v210_v25, %v209_v24 }
  0x81   :  { %s390_s30 = scalar_lea.vmem %s251_s18, 16  ;;  %s394_s6 = scalar_lea.vmem %s251_s18, 32 }
  0x82   :  { %v212_v28 = vadd.f32 %v211_v27, %v174_v26  ;;  %p391_p12 = scmp.ne.s32.totalorder %s251_s18, %s390_s30  ;;  %p395_p13 = scmp.lt.s32.totalorder %s251_s18, %s251_s18 }
  0x83   :  { %p396_p0 = scmp.lt.s32.totalorder %s394_s6, %s390_s30 }
  0x84   :  { %213 = vst [vmem:[#allocation11] sm:$0x1] %v212_v28 }
  0x85   :  { %p397_p1 = por %p396_p0, %p395_p13 }
  0x87   :  { %p398_p2 = pnand %p397_p1, %p391_p12 }
  0x89   :  { %401 = shalt.err (!%p398_p2)
}
  0x8a   :  { %s402_s9 = scalar_lea.hbm %s549_s5, 16 }
  0x8b   :  { %p403_p3 = scmp.ne.s32.totalorder %s549_s5, %s402_s9  ;;  %p406_p4 = scmp.lt.u32.totalorder %s402_s9, %s549_s5 }
  0x8d   :  { %p408_p5 = pnand %p406_p4, %p403_p3 }
  0x8f   :  { %411 = shalt.err (!%p408_p5)
}
  0x90   :  { %253 = dma.vmem_to_hbm [thread:$0]  %s251_s18, 16, %s549_s5, [#allocation12]  }
  0x91   :  { %416 = dma.done.wait [#allocation4], 16  }
  0x92   :  { %417 = vsyncadd [#allocation4], 4294967280 }
  0x93   :  { %418 = dma.done.wait [#allocation9], 32  }
  0x94   :  { %419 = vsyncadd [#allocation9], 4294967264 }
  0x95   :  { %420 = dma.done.wait [#allocation12], 16  }
  0x96   :  { %421 = vsyncadd [#allocation12], 4294967280 }
  0x97   :  { %266 = vsyncpa [#allocation3], 1 }
  0x98   :  { %267 = vsyncpa [#allocation6], 1 }
  0x99   :  { %268 = vsyncpa [#allocation4], 1 }
  0x9a   :  { %269 = vsyncpa [#allocation9], 1 }
  0x9b   :  { %270 = vsyncpa [#allocation12], 1 }

</bundles_post_ra>
